<compile_context>
chip_gen: v5e
topology: v5e:2x2
jax: 0.10.0
libtpu: 0.0.40
codegen_flags: <defaults>
</compile_context>

<pallas_src>
import functools

import jax
import jax.numpy as jnp
from jax.experimental import pallas as pl
from jax.experimental.pallas import tpu as pltpu

LEAKY_SLOPE = 0.01        # torch.nn.LeakyReLU default
LANES = 128               # vreg lane width
NEG_BIG = -1e30           # softmax padding (exp underflows to exactly 0 in f32)


def _round_up(x, m):
    return ((x + m - 1) // m) * m


def pack_params(params):
    """Pack [(W(in,out), b(out,)), ...] into one lane-padded (R, 128) f32 slab.

    Row layout per layer: in_f weight rows (W[i, :] in lanes [:out_f]) followed
    by one bias row.  The LAST layer's bias row is padded with NEG_BIG so the
    padded softmax lanes contribute nothing to max/sum.  Returns
    (slab, layout, out_dim) where layout[i] = (first_row, in_f) as static ints.
    Call this once per parameter update (it is hoisted out of the hot path).
    """
    rows = []
    layout = []
    n_layers = len(params)
    for li, (w, b) in enumerate(params):
        in_f, out_f = w.shape
        assert out_f <= LANES
        layout.append((len(rows), in_f))
        pad = LANES - out_f
        for i in range(in_f):
            rows.append(jnp.pad(w[i, :].astype(jnp.float32), (0, pad)))
        bias_pad = NEG_BIG if li == n_layers - 1 else 0.0
        rows.append(jnp.pad(jnp.reshape(b, (-1,)).astype(jnp.float32), (0, pad),
                            constant_values=bias_pad))
    for _ in range((-len(rows)) % 8):          # sublane-tile the row count
        rows.append(jnp.zeros((LANES,), jnp.float32))
    out_dim = params[-1][0].shape[1]
    return jnp.stack(rows, axis=0), tuple(layout), out_dim


def _make_policy_kernel(layout, n_layers, out_dim):
    """Kernel closure over the static packed-parameter layout."""

    def kernel(x_ref, p_ref, o_ref):
        # x_ref: (TB, in_f0) input features (narrow, no lane padding)
        # p_ref: (R, 128) packed weights/biases (resident, one DMA)
        # o_ref: (TB, out_dim) softmax output (narrow partial store)
        h = x_ref[...]                           # (TB, in_f0)
        for li, (row0, in_f) in enumerate(layout):
            # y = sum_i h[:, i] * W_row_i + bias   (VPU broadcast MACs)
            acc = (h[:, 0:1] * p_ref[row0:row0 + 1, :]
                   + p_ref[row0 + in_f:row0 + in_f + 1, :])
            for i in range(1, in_f):
                acc = acc + h[:, i:i + 1] * p_ref[row0 + i:row0 + i + 1, :]
            if li < n_layers - 1:
                h = jnp.where(acc >= 0, acc, LEAKY_SLOPE * acc)
            else:
                # Numerically stable softmax over lanes; padded lanes hold
                # NEG_BIG -> exp underflows to 0, so they don't touch max/denom.
                # Exact divide (approx reciprocal broke the sum-to-1 property).
                m = jnp.max(acc, axis=-1, keepdims=True)
                e = jnp.exp(acc - m)
                denom = jnp.sum(e, axis=-1, keepdims=True)
                probs = e / denom
                o_ref[...] = probs[:, :out_dim]

    return kernel


@functools.partial(jax.jit, static_argnames=("layout", "out_dim", "block_b"))
def policy_apply(x, packed, *, layout, out_dim, block_b=None):
    """Jitted forward: x (B, in_features) f32, packed = pack_params(...) slab."""
    B, in_f0 = x.shape
    n_layers = len(layout)

    if block_b is None:
        Bp0 = _round_up(max(B, 1), 8)
        if Bp0 <= 8:
            block_b = 8
        else:
            # tile cap 1024 rows; prefer >= 2 grid steps (v7x: 2 TensorCores)
            block_b = min(1024, max(8, _round_up(pl.cdiv(Bp0, 2), 8)))
    block_b = _round_up(block_b, 8)
    Bp = _round_up(B, block_b)

    x_p = x.astype(jnp.float32)
    if Bp != B:
        x_p = jnp.pad(x_p, ((0, Bp - B), (0, 0)))   # batch pad only, no lane pad

    kernel = _make_policy_kernel(layout, n_layers, out_dim)

    out = pl.pallas_call(
        kernel,
        out_shape=jax.ShapeDtypeStruct((Bp, out_dim), jnp.float32),
        grid=(Bp // block_b,),
        in_specs=[
            # last dim == full array dim -> legal narrow block, minimal DMA bytes
            pl.BlockSpec((block_b, in_f0), lambda i: (i, 0)),
            pl.BlockSpec(packed.shape, lambda i: (0, 0)),   # packed params (1 DMA)
        ],
        out_specs=pl.BlockSpec((block_b, out_dim), lambda i: (i, 0)),
        compiler_params=pltpu.CompilerParams(
            dimension_semantics=("parallel",),
            vmem_limit_bytes=32 * 1024 * 1024,
        ),
    )(x_p, packed)

    return out[:B]


def policy_forward(x, params, *, block_b=None):
    """Convenience wrapper: packs params then calls the jitted forward."""
    packed, layout, out_dim = pack_params(params)
    return policy_apply(x, packed, layout=layout, out_dim=out_dim, block_b=block_b)


def init_params(key, layer_sizes=(2, 3, 4), input_size=1, output_size=4):
    """Deterministic init mirroring nn.Linear's U(-1/sqrt(in), 1/sqrt(in))."""
    dims = [input_size] + list(layer_sizes) + [output_size]
    params = []
    for i in range(len(dims) - 1):
        in_f, out_f = dims[i], dims[i + 1]
        key, kw, kb = jax.random.split(key, 3)
        bound = 1.0 / jnp.sqrt(jnp.float32(in_f))
        w = jax.random.uniform(kw, (in_f, out_f), jnp.float32, -bound, bound)
        b = jax.random.uniform(kb, (out_f,), jnp.float32, -bound, bound)
        params.append((w, b))
    return params


def policy_ref(x, params):
    """Pure-JAX reference for correctness check."""
    h = x
    for i, (w, b) in enumerate(params):
        h = h @ w + b
        if i < len(params) - 1:
            h = jnp.where(h >= 0, h, LEAKY_SLOPE * h)
    return jax.nn.softmax(h, axis=-1)


if __name__ == "__main__":
    key = jax.random.PRNGKey(0)
    kx, kp = jax.random.split(key)

    batch = 8
    input_size = 1
    x = jax.random.normal(kx, (batch, input_size), jnp.float32)

    params = init_params(kp, layer_sizes=(2, 3, 4),
                         input_size=input_size, output_size=4)

    out = jax.block_until_ready(policy_forward(x, params))
    ref = policy_ref(x, params)

    assert out.shape == (batch, 4)
    assert jnp.allclose(out, ref, atol=1e-4, rtol=1e-4), (out, ref)
    assert jnp.allclose(jnp.sum(out, axis=-1), 1.0, atol=1e-4)

    print("KERNEL_OK")
</pallas_src>

<mosaic_0001>
module attributes {stable_mosaic.version = 11 : i64} {
  func.func @kernel(%arg0: i32, %arg1: memref<8x1xf32, #tpu.memory_space<vmem>>, %arg2: memref<16x128xf32, #tpu.memory_space<vmem>>, %arg3: memref<8x4xf32, #tpu.memory_space<vmem>>) attributes {dimension_semantics = [#tpu.dimension_semantics<parallel>], iteration_bounds = array<i64: 1>, scalar_prefetch = 0 : i64, scratch_operands = 0 : i64, tpu.core_type = #tpu.core_type<tc>, window_params = [{transform_indices = @transform_0, window_bounds = array<i64: 8, 1>}, {pipeline_mode = #tpu.pipeline_mode<synchronous>, transform_indices = @transform_1, window_bounds = array<i64: 16, 128>}, {transform_indices = @transform_2, window_bounds = array<i64: 8, 4>}]} {
    %c0 = arith.constant 0 : index
    %c0_0 = arith.constant 0 : index
    %0 = vector.load %arg1[%c0, %c0_0] : memref<8x1xf32, #tpu.memory_space<vmem>>, vector<8x1xf32>
    %c0_1 = arith.constant 0 : index
    %c0_2 = arith.constant 0 : index
    %1 = vector.load %arg2[%c0_1, %c0_2] : memref<16x128xf32, #tpu.memory_space<vmem>>, vector<1x128xf32>
    %2 = vector.broadcast %0 : vector<8x1xf32> to vector<8x128xf32>
    %3 = vector.broadcast %1 : vector<1x128xf32> to vector<8x128xf32>
    %4 = arith.mulf %2, %3 : vector<8x128xf32>
    %c1 = arith.constant 1 : index
    %c0_3 = arith.constant 0 : index
    %5 = vector.load %arg2[%c1, %c0_3] : memref<16x128xf32, #tpu.memory_space<vmem>>, vector<1x128xf32>
    %6 = vector.broadcast %5 : vector<1x128xf32> to vector<8x128xf32>
    %7 = arith.addf %4, %6 : vector<8x128xf32>
    %cst = arith.constant 0.000000e+00 : f32
    %8 = vector.broadcast %cst : f32 to vector<8x128xf32>
    %9 = arith.cmpf oge, %7, %8 : vector<8x128xf32>
    %cst_4 = arith.constant 0.00999999977 : f32
    %10 = vector.broadcast %cst_4 : f32 to vector<8x128xf32>
    %11 = arith.mulf %10, %7 : vector<8x128xf32>
    %12 = arith.select %9, %7, %11 : vector<8x128xi1>, vector<8x128xf32>
    %13 = vector.extract_strided_slice %12 {offsets = [0, 0], sizes = [8, 1], strides = [1, 1]} : vector<8x128xf32> to vector<8x1xf32>
    %c2 = arith.constant 2 : index
    %c0_5 = arith.constant 0 : index
    %14 = vector.load %arg2[%c2, %c0_5] : memref<16x128xf32, #tpu.memory_space<vmem>>, vector<1x128xf32>
    %15 = vector.broadcast %13 : vector<8x1xf32> to vector<8x128xf32>
    %16 = vector.broadcast %14 : vector<1x128xf32> to vector<8x128xf32>
    %17 = arith.mulf %15, %16 : vector<8x128xf32>
    %c4 = arith.constant 4 : index
    %c0_6 = arith.constant 0 : index
    %18 = vector.load %arg2[%c4, %c0_6] : memref<16x128xf32, #tpu.memory_space<vmem>>, vector<1x128xf32>
    %19 = vector.broadcast %18 : vector<1x128xf32> to vector<8x128xf32>
    %20 = arith.addf %17, %19 : vector<8x128xf32>
    %21 = vector.extract_strided_slice %12 {offsets = [0, 1], sizes = [8, 1], strides = [1, 1]} : vector<8x128xf32> to vector<8x1xf32>
    %c3 = arith.constant 3 : index
    %c0_7 = arith.constant 0 : index
    %22 = vector.load %arg2[%c3, %c0_7] : memref<16x128xf32, #tpu.memory_space<vmem>>, vector<1x128xf32>
    %23 = vector.broadcast %21 : vector<8x1xf32> to vector<8x128xf32>
    %24 = vector.broadcast %22 : vector<1x128xf32> to vector<8x128xf32>
    %25 = arith.mulf %23, %24 : vector<8x128xf32>
    %26 = arith.addf %20, %25 : vector<8x128xf32>
    %cst_8 = arith.constant 0.000000e+00 : f32
    %27 = vector.broadcast %cst_8 : f32 to vector<8x128xf32>
    %28 = arith.cmpf oge, %26, %27 : vector<8x128xf32>
    %cst_9 = arith.constant 0.00999999977 : f32
    %29 = vector.broadcast %cst_9 : f32 to vector<8x128xf32>
    %30 = arith.mulf %29, %26 : vector<8x128xf32>
    %31 = arith.select %28, %26, %30 : vector<8x128xi1>, vector<8x128xf32>
    %32 = vector.extract_strided_slice %31 {offsets = [0, 0], sizes = [8, 1], strides = [1, 1]} : vector<8x128xf32> to vector<8x1xf32>
    %c5 = arith.constant 5 : index
    %c0_10 = arith.constant 0 : index
    %33 = vector.load %arg2[%c5, %c0_10] : memref<16x128xf32, #tpu.memory_space<vmem>>, vector<1x128xf32>
    %34 = vector.broadcast %32 : vector<8x1xf32> to vector<8x128xf32>
    %35 = vector.broadcast %33 : vector<1x128xf32> to vector<8x128xf32>
    %36 = arith.mulf %34, %35 : vector<8x128xf32>
    %c8 = arith.constant 8 : index
    %c0_11 = arith.constant 0 : index
    %37 = vector.load %arg2[%c8, %c0_11] : memref<16x128xf32, #tpu.memory_space<vmem>>, vector<1x128xf32>
    %38 = vector.broadcast %37 : vector<1x128xf32> to vector<8x128xf32>
    %39 = arith.addf %36, %38 : vector<8x128xf32>
    %40 = vector.extract_strided_slice %31 {offsets = [0, 1], sizes = [8, 1], strides = [1, 1]} : vector<8x128xf32> to vector<8x1xf32>
    %c6 = arith.constant 6 : index
    %c0_12 = arith.constant 0 : index
    %41 = vector.load %arg2[%c6, %c0_12] : memref<16x128xf32, #tpu.memory_space<vmem>>, vector<1x128xf32>
    %42 = vector.broadcast %40 : vector<8x1xf32> to vector<8x128xf32>
    %43 = vector.broadcast %41 : vector<1x128xf32> to vector<8x128xf32>
    %44 = arith.mulf %42, %43 : vector<8x128xf32>
    %45 = arith.addf %39, %44 : vector<8x128xf32>
    %46 = vector.extract_strided_slice %31 {offsets = [0, 2], sizes = [8, 1], strides = [1, 1]} : vector<8x128xf32> to vector<8x1xf32>
    %c7 = arith.constant 7 : index
    %c0_13 = arith.constant 0 : index
    %47 = vector.load %arg2[%c7, %c0_13] : memref<16x128xf32, #tpu.memory_space<vmem>>, vector<1x128xf32>
    %48 = vector.broadcast %46 : vector<8x1xf32> to vector<8x128xf32>
    %49 = vector.broadcast %47 : vector<1x128xf32> to vector<8x128xf32>
    %50 = arith.mulf %48, %49 : vector<8x128xf32>
    %51 = arith.addf %45, %50 : vector<8x128xf32>
    %cst_14 = arith.constant 0.000000e+00 : f32
    %52 = vector.broadcast %cst_14 : f32 to vector<8x128xf32>
    %53 = arith.cmpf oge, %51, %52 : vector<8x128xf32>
    %cst_15 = arith.constant 0.00999999977 : f32
    %54 = vector.broadcast %cst_15 : f32 to vector<8x128xf32>
    %55 = arith.mulf %54, %51 : vector<8x128xf32>
    %56 = arith.select %53, %51, %55 : vector<8x128xi1>, vector<8x128xf32>
    %57 = vector.extract_strided_slice %56 {offsets = [0, 0], sizes = [8, 1], strides = [1, 1]} : vector<8x128xf32> to vector<8x1xf32>
    %c9 = arith.constant 9 : index
    %c0_16 = arith.constant 0 : index
    %58 = vector.load %arg2[%c9, %c0_16] : memref<16x128xf32, #tpu.memory_space<vmem>>, vector<1x128xf32>
    %59 = vector.broadcast %57 : vector<8x1xf32> to vector<8x128xf32>
    %60 = vector.broadcast %58 : vector<1x128xf32> to vector<8x128xf32>
    %61 = arith.mulf %59, %60 : vector<8x128xf32>
    %c13 = arith.constant 13 : index
    %c0_17 = arith.constant 0 : index
    %62 = vector.load %arg2[%c13, %c0_17] : memref<16x128xf32, #tpu.memory_space<vmem>>, vector<1x128xf32>
    %63 = vector.broadcast %62 : vector<1x128xf32> to vector<8x128xf32>
    %64 = arith.addf %61, %63 : vector<8x128xf32>
    %65 = vector.extract_strided_slice %56 {offsets = [0, 1], sizes = [8, 1], strides = [1, 1]} : vector<8x128xf32> to vector<8x1xf32>
    %c10 = arith.constant 10 : index
    %c0_18 = arith.constant 0 : index
    %66 = vector.load %arg2[%c10, %c0_18] : memref<16x128xf32, #tpu.memory_space<vmem>>, vector<1x128xf32>
    %67 = vector.broadcast %65 : vector<8x1xf32> to vector<8x128xf32>
    %68 = vector.broadcast %66 : vector<1x128xf32> to vector<8x128xf32>
    %69 = arith.mulf %67, %68 : vector<8x128xf32>
    %70 = arith.addf %64, %69 : vector<8x128xf32>
    %71 = vector.extract_strided_slice %56 {offsets = [0, 2], sizes = [8, 1], strides = [1, 1]} : vector<8x128xf32> to vector<8x1xf32>
    %c11 = arith.constant 11 : index
    %c0_19 = arith.constant 0 : index
    %72 = vector.load %arg2[%c11, %c0_19] : memref<16x128xf32, #tpu.memory_space<vmem>>, vector<1x128xf32>
    %73 = vector.broadcast %71 : vector<8x1xf32> to vector<8x128xf32>
    %74 = vector.broadcast %72 : vector<1x128xf32> to vector<8x128xf32>
    %75 = arith.mulf %73, %74 : vector<8x128xf32>
    %76 = arith.addf %70, %75 : vector<8x128xf32>
    %77 = vector.extract_strided_slice %56 {offsets = [0, 3], sizes = [8, 1], strides = [1, 1]} : vector<8x128xf32> to vector<8x1xf32>
    %c12 = arith.constant 12 : index
    %c0_20 = arith.constant 0 : index
    %78 = vector.load %arg2[%c12, %c0_20] : memref<16x128xf32, #tpu.memory_space<vmem>>, vector<1x128xf32>
    %79 = vector.broadcast %77 : vector<8x1xf32> to vector<8x128xf32>
    %80 = vector.broadcast %78 : vector<1x128xf32> to vector<8x128xf32>
    %81 = arith.mulf %79, %80 : vector<8x128xf32>
    %82 = arith.addf %76, %81 : vector<8x128xf32>
    %cst_21 = arith.constant dense<0xFF800000> : vector<8xf32>
    %83 = vector.multi_reduction <maximumf>, %82, %cst_21 [1] : vector<8x128xf32> to vector<8xf32>
    %84 = vector.shape_cast %83 : vector<8xf32> to vector<8x1xf32>
    %85 = vector.broadcast %84 : vector<8x1xf32> to vector<8x128xf32>
    %86 = arith.subf %82, %85 : vector<8x128xf32>
    %87 = math.exp %86 : vector<8x128xf32>
    %cst_22 = arith.constant dense<0.000000e+00> : vector<8xf32>
    %88 = vector.multi_reduction <add>, %87, %cst_22 [1] : vector<8x128xf32> to vector<8xf32>
    %89 = vector.shape_cast %88 : vector<8xf32> to vector<8x1xf32>
    %90 = vector.broadcast %89 : vector<8x1xf32> to vector<8x128xf32>
    %91 = arith.divf %87, %90 : vector<8x128xf32>
    %92 = vector.extract_strided_slice %91 {offsets = [0, 0], sizes = [8, 4], strides = [1, 1]} : vector<8x128xf32> to vector<8x4xf32>
    %c0_23 = arith.constant 0 : index
    %c0_24 = arith.constant 0 : index
    %93 = vector.load %arg3[%c0_23, %c0_24] : memref<8x4xf32, #tpu.memory_space<vmem>>, vector<8x4xf32>
    tpu.vector_store %arg3[%c0_23, %c0_24], %92 {strides = array<i32>} : memref<8x4xf32, #tpu.memory_space<vmem>>, vector<8x4xf32>,
    return
  }
  func.func @transform_0(%arg0: i32) -> (i32, i32) {
    %c0_i32 = arith.constant 0 : i32
    %c0_i32_0 = arith.constant 0 : i32
    return %arg0, %c0_i32 : i32, i32
  }
  func.func @transform_1(%arg0: i32) -> (i32, i32) {
    %c0_i32 = arith.constant 0 : i32
    %c0_i32_0 = arith.constant 0 : i32
    %c0_i32_1 = arith.constant 0 : i32
    return %c0_i32, %c0_i32_0 : i32, i32
  }
  func.func @transform_2(%arg0: i32) -> (i32, i32) {
    %c0_i32 = arith.constant 0 : i32
    %c0_i32_0 = arith.constant 0 : i32
    return %arg0, %c0_i32 : i32, i32
  }
}

</mosaic_0001>

<bundles_post_ra>
// kernel: policy_apply.1
= control target key start
LH: loop header
LB: loop body
LE: loop exit
PB: predicated region body
PF: predicated region fallthrough
CT: control target
= control target key end

     0   :  { %7 = vsyncpa [#allocation3], 0  ;;  %s216_s12 = smov [#allocation2]   ;;  %s217_s14 = smov 128   ;;  %s247_s0 = inlined_call_operand.vmem [shape: f32[8,1], index: 0, kind: input, shape index: {}]   ;;  %s248_s1 = inlined_call_operand.hbm [shape: f32[16,128], index: 1, kind: input, shape index: {}]   ;;  %s249_s2 = inlined_call_operand.vmem [shape: f32[8,4], index: 2, kind: output, shape index: {}]  }
   0x1   :  { %s14_s11 = sshll.u32 %s248_s1, 4  ;;  %s16_s13 = sshll.u32 %s216_s12, 4  ;;  %s15_s11 = int_to_ptr.hbm [resolvable:$true] %s14_s11  ;;  %s17_s13 = int_to_ptr.vmem [resolvable:$true] %s16_s13 }
   0x2   :  { %s218_s15 = smov 8  }
   0x3   :  { %22 = dma.hbm_to_vmem [thread:$0]  %s15_s11, 256, %s17_s13, [#allocation3], %s217_s14, %s217_s14, %s218_s15  }
   0x4   :  { %214 = dma.done.wait [#allocation3], 256  }
   0x5   :  { %215 = vsyncadd [#allocation3], 4294967040  ;;  %v219_v0 = vmov 0   ;;  %v27_v1 = vld [vmem:[%s247_s0] sm:$0xff]  ;;  %v220_v2 = vmov 1   ;;  %v221_v21 = vmov 2  }
   0x6   :  { %165 = vset.pattern.permute.xlu0 %v219_v0  ;;  %166 = vset.pattern.permute.xlu1 %v220_v2  ;;  %v172_v3 = vld [vmem:[#allocation2] ss:$0 sm:$0xff]  ;;  %v173_v4 = vld [vmem:[#allocation2 + $0x1] ss:$0 sm:$0xff]  ;;  %v175_v10 = vld [vmem:[#allocation2 + $0x2] ss:$0 sm:$0xff] }
   0x7   :  { %31 = vperm.xlu0 %165, %v27_v1   ;;  %168 = vset.pattern.permute.xlu2 %v220_v2  ;;  %v174_v11 = vld [vmem:[#allocation2 + $0x3] ss:$0 sm:$0xff]  ;;  %v176_v12 = vld [vmem:[#allocation2 + $0x4] ss:$0 sm:$0xff]  ;;  %v179_v23 = vld [vmem:[#allocation2 + $0x5] ss:$0 sm:$0xff] }
   0x8   :  { %v177_v24 = vld [vmem:[#allocation2 + $0x6] ss:$0 sm:$0xff]  ;;  %v180_v25 = vld [vmem:[#allocation2 + $0x8] ss:$0 sm:$0xff]  ;;  %v178_v27 = vld [vmem:[#allocation2 + $0x7] ss:$0 sm:$0xff] }
   0x9   :  { %v222_v37 = vmov 3   ;;  %v183_v38 = vld [vmem:[#allocation2 + $0x9] ss:$0 sm:$0xff]  ;;  %v184_v39 = vld [vmem:[#allocation2 + $0xd] ss:$0 sm:$0xff]  ;;  %vm151_vm7 = vcmask 31744  }
   0xa   :  { %v182_v40 = vld [vmem:[#allocation2 + $0xa] ss:$0 sm:$0xff]  ;;  %v181_v45 = vld [vmem:[#allocation2 + $0xb] ss:$0 sm:$0xff]  ;;  %v185_v49 = vld [vmem:[#allocation2 + $0xc] ss:$0 sm:$0xff] }
  0x79   :  { %v32_v5 = vpop.permute.xlu0 %31 }
  0x7a   :  { %v35_v6 = vmul.f32 %v172_v3, %v32_v5 }
  0x7c   :  { %v38_v7 = vadd.f32 %v173_v4, %v35_v6 }
  0x7e   :  { %vm39_vm0 = vcmp.ge.f32.partialorder %v38_v7, 0.0  ;;  %v40_v8 = vmul.f32 0.01, %v38_v7 }
  0x80   :  { %v41_v9 = vsel %vm39_vm0, %v38_v7, %v40_v8 }
  0x81   :  { %55 = vperm.xlu1 %166, %v41_v9   ;;  %45 = vperm.xlu0 %165, %v41_v9  }
  0x89   :  { %167 = vset.pattern.permute.xlu1 %v219_v0 }
  0xf3   :  { %v56_v13 = vpop.permute.xlu1 %55  ;;  %v46_v14 = vpop.permute.xlu0 %45 }
  0xf4   :  { %v49_v15 = vmul.f32 %v175_v10, %v46_v14  ;;  %v59_v16 = vmul.f32 %v174_v11, %v56_v13 }
  0xf6   :  { %v52_v17 = vadd.f32 %v176_v12, %v49_v15 }
  0xf8   :  { %v60_v18 = vadd.f32 %v59_v16, %v52_v17 }
  0xfa   :  { %vm61_vm1 = vcmp.ge.f32.partialorder %v60_v18, 0.0  ;;  %v62_v19 = vmul.f32 0.01, %v60_v18 }
  0xfc   :  { %v63_v20 = vsel %vm61_vm1, %v60_v18, %v62_v19 }
  0xfd   :  { %77 = vperm.xlu2 %168, %v63_v20   ;;  %67 = vperm.xlu1 %167, %v63_v20  }
 0x105   :  { %169 = vset.pattern.permute.xlu2 %v221_v21  ;;  %170 = vset.pattern.permute.xlu1 %v220_v2 }
 0x106   :  { %85 = vperm.xlu2 %169, %v63_v20  }
 0x157   :  { %v78_v22 = vpop.permute.xlu2 %77 }
 0x158   :  { %v81_v30 = vmul.f32 %v177_v24, %v78_v22 }
 0x160   :  { %v86_v29 = vpop.permute.xlu2 %85 }
 0x161   :  { %v89_v32 = vmul.f32 %v178_v27, %v86_v29 }
 0x16f   :  { %v68_v26 = vpop.permute.xlu1 %67 }
 0x170   :  { %v71_v28 = vmul.f32 %v179_v23, %v68_v26 }
 0x172   :  { %v74_v31 = vadd.f32 %v180_v25, %v71_v28 }
 0x174   :  { %v82_v33 = vadd.f32 %v81_v30, %v74_v31 }
 0x176   :  { %v90_v34 = vadd.f32 %v89_v32, %v82_v33 }
 0x178   :  { %vm91_vm2 = vcmp.ge.f32.partialorder %v90_v34, 0.0  ;;  %v92_v35 = vmul.f32 0.01, %v90_v34 }
 0x17a   :  { %v93_v36 = vsel %vm91_vm2, %v90_v34, %v92_v35 }
 0x17b   :  { %115 = vperm.xlu2 %169, %v93_v36   ;;  %107 = vperm.xlu1 %170, %v93_v36  }
 0x17c   :  { %97 = vperm.xlu0 %165, %v93_v36  }
 0x184   :  { %171 = vset.pattern.permute.xlu0 %v222_v37 }
 0x185   :  { %123 = vperm.xlu0 %171, %v93_v36  }
 0x1d5   :  { %v116_v47 = vpop.permute.xlu2 %115 }
 0x1d6   :  { %v119_v50 = vmul.f32 %v181_v45, %v116_v47 }
 0x1ed   :  { %v108_v42 = vpop.permute.xlu1 %107 }
 0x1ee   :  { %v98_v41 = vpop.permute.xlu0 %97  ;;  %v111_v46 = vmul.f32 %v182_v40, %v108_v42 }
 0x1ef   :  { %v101_v43 = vmul.f32 %v183_v38, %v98_v41 }
 0x1f1   :  { %v104_v44 = vadd.f32 %v184_v39, %v101_v43 }
 0x1f3   :  { %v112_v48 = vadd.f32 %v111_v46, %v104_v44 }
 0x1f5   :  { %v120_v53 = vadd.f32 %v119_v50, %v112_v48 }
 0x1f7   :  { %v124_v51 = vpop.permute.xlu0 %123 }
 0x1f8   :  { %v127_v52 = vmul.f32 %v185_v49, %v124_v51 }
 0x1fa   :  { %v128_v54 = vadd.f32 %v127_v52, %v120_v53 }
 0x1fc   :  { %129 = vmax.xlane.f32.xlu1 %v128_v54 }
 0x26f   :  { %v130_v55 = vpop.xlane.xlu1 %129 }
 0x270   :  { %v131_v56 = vsub.f32 %v128_v54, %v130_v55 }
 0x272   :  { %v132_v57 = vmul.f32 1.442695, %v131_v56 }
 0x274   :  { %186 = vpow2.f32 %v132_v57 }
 0x27a   :  { %v187_v58 = vpop.eup %186 }
 0x27b   :  { %134 = vadd.xlane.f32.xlu2 %v187_v58 }
 0x2ee   :  { %v135_v59 = vpop.xlane.xlu2 %134 }
 0x2ef   :  { %188 = vrcp.f32 %v135_v59  ;;  %v147_v63 = vand.u32 2147483648, %v135_v59  ;;  %v145_v1 = vand.u32 2147483647, %v135_v59  ;;  %vm141_vm4 = vweird.f32 %v135_v59 }
 0x2f1   :  { %v148_v3 = vor.u32 1.1754944e-38, %v147_v63  ;;  %vm146_vm6 = vcmp.eq.f32.partialorder %v145_v1, 8.507059e+37 }
 0x2f5   :  { %v189_v60 = vpop.eup %188 }
 0x2f6   :  { %v137_v61 = vmul.f32 %v189_v60, %v135_v59  ;;  %vm142_vm3 = vweird.f32 %v189_v60 }
 0x2f7   :  { %vm143_vm5 = vmor %vm141_vm4, %vm142_vm3 }
 0x2f8   :  { %v138_v62 = vsub.f32 1.0, %v137_v61 }
 0x2fa   :  { %v139_v0 = vmul.f32 %v189_v60, %v138_v62 }
 0x2fc   :  { %v140_v2 = vadd.f32 %v189_v60, %v139_v0 }
 0x2fe   :  { %v144_v4 = vsel %vm143_vm5, %v189_v60, %v140_v2 }
 0x2ff   :  { %v149_v5 = vsel %vm146_vm6, %v148_v3, %v144_v4 }
 0x300   :  { %v150_v6 = vmul.f32 %v187_v58, %v149_v5 }
 0x302   :  { %152 = vst.msk [vmem:[%s249_s2] sm:$0xff] %vm151_vm7, %v150_v6 }
 0x303   :  { %157 = vsyncpa [#allocation3], 1 }

</bundles_post_ra>
